<compile_context>
chip_gen: v5e
topology: v5e:2x2
jax: 0.10.0
libtpu: 0.0.40
codegen_flags: <defaults>
</compile_context>

<pallas_src>
import functools
import math

import jax
import jax.numpy as jnp
from jax.experimental import pallas as pl
from jax.experimental.pallas import tpu as pltpu


LANE = 128
MXU_W = 256   # MXU output-column width on v6e/v7x (v5e is 128; using 256 there
              # only makes the fuse heuristic slightly conservative).


def _round_up(x, m):
    return ((x + m - 1) // m) * m


def _cdiv(a, b):
    return (a + b - 1) // b


def _pick_tile(n, candidates=(512, 256, 128), slack=1.1):
    """Largest tile whose padded extent is within `slack` of the minimum."""
    padded = {t: _cdiv(n, t) * t for t in candidates}
    best = min(padded.values())
    for t in candidates:          # largest first
        if padded[t] <= slack * best:
            return t
    return candidates[-1]


def _make_gcn_kernel(*, fuse_weight, acc_in_out, n_real, t_k, mask_tail,
                     compute_dtype):
    """Row-tile x contraction-tile kernel: acc += adj_tile @ feat_tile
    (compute_dtype MXU inputs, f32 accumulation); the epilogue optionally
    applies the (bf16) weight matrix, then adds the bias."""

    def _adj_tile(adj_ref, k):
        a = adj_ref[...]
        if mask_tail:
            # Zero the contraction-tail columns of the ragged last k tile
            # (out-of-range region of a partial block is garbage otherwise).
            col = jax.lax.broadcasted_iota(jnp.int32, a.shape, 1)
            a = jnp.where(col + k * t_k < n_real, a, jnp.zeros_like(a))
        return a.astype(compute_dtype)

    if fuse_weight:
        def kernel(adj_ref, feat_ref, w_ref, b_ref, o_ref, acc_ref):
            k = pl.program_id(1)

            @pl.when(k == 0)
            def _init():
                acc_ref[...] = jnp.zeros_like(acc_ref)

            acc_ref[...] += jnp.dot(_adj_tile(adj_ref, k), feat_ref[...],
                                    preferred_element_type=jnp.float32)

            @pl.when(k == pl.num_programs(1) - 1)
            def _finalize():
                # (adj @ x) @ w: small per-row-tile matmul, bf16 MXU rate.
                out = jnp.dot(acc_ref[...].astype(compute_dtype), w_ref[...],
                              preferred_element_type=jnp.float32)
                o_ref[...] = (out + b_ref[...]).astype(o_ref.dtype)

    elif acc_in_out:
        # Hoisted path, f32 output: accumulate directly into the resident
        # output block (no scratch, no extra copy in the epilogue).
        def kernel(adj_ref, feat_ref, b_ref, o_ref):
            k = pl.program_id(1)

            @pl.when(k == 0)
            def _init():
                o_ref[...] = jnp.zeros_like(o_ref)

            o_ref[...] += jnp.dot(_adj_tile(adj_ref, k), feat_ref[...],
                                  preferred_element_type=jnp.float32)

            @pl.when(k == pl.num_programs(1) - 1)
            def _finalize():
                o_ref[...] = o_ref[...] + b_ref[...]

    else:
        def kernel(adj_ref, feat_ref, b_ref, o_ref, acc_ref):
            k = pl.program_id(1)

            @pl.when(k == 0)
            def _init():
                acc_ref[...] = jnp.zeros_like(acc_ref)

            acc_ref[...] += jnp.dot(_adj_tile(adj_ref, k), feat_ref[...],
                                    preferred_element_type=jnp.float32)

            @pl.when(k == pl.num_programs(1) - 1)
            def _finalize():
                o_ref[...] = (acc_ref[...] + b_ref[...]).astype(o_ref.dtype)

    return kernel


@functools.partial(jax.jit, static_argnames=("out_dtype", "compute_dtype"))
def gcn_forward(x, adj, w, b=None, *, out_dtype=jnp.float32,
                compute_dtype=jnp.bfloat16):
    """GraphConvolution forward: adj @ (x @ w) + b (same semantics as PyTorch).

    adj may be f32 (cast to `compute_dtype` on-chip after the DMA) or already
    bf16 (halves its HBM traffic).  MXU matmuls run in `compute_dtype` with f32
    accumulation (~1e-2 relative accuracy for bf16); pass
    compute_dtype=jnp.float32 for full precision (slower, emulated f32 MXU).
    """
    N, F_in = x.shape
    F_in_w, F_out = w.shape
    assert F_in_w == F_in and adj.shape == (N, N)
    if b is None:
        b = jnp.zeros((F_out,), jnp.float32)

    out_dtype = jnp.dtype(out_dtype)
    compute_dtype = jnp.dtype(compute_dtype)

    F_in_pad = _round_up(F_in, LANE)
    F_out_pad = _round_up(F_out, LANE)

    # Matmul order: contract the N x N adjacency against the feature width that
    # under-fills the 256-wide MXU the least; tie-break on the narrower padded
    # width (less feat re-streaming DMA, which usually dominates).
    fuse_weight = ((_round_up(F_in_pad, MXU_W), F_in_pad)
                   <= (_round_up(F_out_pad, MXU_W), F_out_pad))
    if fuse_weight:
        feat, F_mid, F_mid_pad = x, F_in, F_in_pad           # kernel: (adj @ x) @ w
    else:
        # Hoist the small support = x @ w matmul; kernel does adj @ support.
        feat = jnp.dot(x, w, preferred_element_type=jnp.float32)
        F_mid, F_mid_pad = F_out, F_out_pad

    # Adaptive tiles; keep >= 2 row tiles where possible (v7x megacore).
    T_k = _pick_tile(N)
    T_row = _pick_tile(N)
    while T_row > 128 and _cdiv(N, T_row) < 2:
        T_row //= 2

    n_row_tiles = _cdiv(N, T_row)
    n_k_tiles = _cdiv(N, T_k)
    mask_tail = (N % T_k) != 0
    Nk_pad = n_k_tiles * T_k

    # feat is tiny relative to adj: pad rows to the k-tile multiple (so masked
    # adj tail columns hit guaranteed zeros) and cols to a lane multiple
    # (unmasked stores / MXU-friendly), then cast to the compute dtype.
    feat_p = jnp.pad(feat, ((0, Nk_pad - N), (0, F_mid_pad - F_mid))).astype(compute_dtype)
    b_p = jnp.pad(b.astype(jnp.float32), (0, F_out_pad - F_out)).reshape(1, F_out_pad)

    acc_in_out = (not fuse_weight) and out_dtype == jnp.dtype(jnp.float32)
    kernel = _make_gcn_kernel(
        fuse_weight=fuse_weight, acc_in_out=acc_in_out, n_real=N, t_k=T_k,
        mask_tail=mask_tail, compute_dtype=compute_dtype)

    operands = [adj, feat_p]
    in_specs = [
        pl.BlockSpec((T_row, T_k), lambda i, k: (i, k)),            # adj tile (unpadded)
        pl.BlockSpec((T_k, F_mid_pad), lambda i, k: (k, 0)),        # feature tile
    ]
    if fuse_weight:
        # bf16 resident weight: half the f32 DMA/VMEM and a native-rate epilogue.
        w_p = jnp.pad(w, ((0, F_in_pad - F_in), (0, F_out_pad - F_out))).astype(compute_dtype)
        operands.append(w_p)
        in_specs.append(pl.BlockSpec((F_in_pad, F_out_pad), lambda i, k: (0, 0)))
    operands.append(b_p)
    in_specs.append(pl.BlockSpec((1, F_out_pad), lambda i, k: (0, 0)))

    out_spec = pl.BlockSpec((T_row, F_out_pad), lambda i, k: (i, 0))

    scratch_shapes = []
    if fuse_weight or not acc_in_out:
        scratch_shapes.append(pltpu.VMEM((T_row, F_mid_pad), jnp.float32))

    # Advisory cost estimate (counts feat re-streaming once per row tile; x@w
    # FLOPs only when the weight matmul actually runs inside the kernel).
    flops = 2 * (n_row_tiles * T_row) * (n_k_tiles * T_k) * F_mid_pad
    if fuse_weight:
        flops += 2 * (n_row_tiles * T_row) * F_in_pad * F_out_pad
    bytes_accessed = (
        N * N * adj.dtype.itemsize                               # adj: streamed once
        + n_row_tiles * feat_p.size * feat_p.dtype.itemsize      # feat: re-streamed
        + (F_in_pad * F_out_pad * compute_dtype.itemsize if fuse_weight else 0)
        + F_out_pad * 4
        + N * F_out_pad * out_dtype.itemsize
    )
    cost = pl.CostEstimate(flops=int(flops), transcendentals=0,
                           bytes_accessed=int(bytes_accessed))

    # Generation-aware VMEM budget: double-buffered adj/feat/out tiles +
    # resident w/b + f32 accumulator, with headroom for Mosaic internal scratch.
    est_vmem = (
        2 * T_row * T_k * adj.dtype.itemsize
        + 2 * T_k * F_mid_pad * feat_p.dtype.itemsize
        + (2 * F_in_pad * F_out_pad * compute_dtype.itemsize if fuse_weight else 0)
        + 2 * F_out_pad * 4
        + 2 * T_row * F_out_pad * out_dtype.itemsize
        + (T_row * F_mid_pad * 4 if scratch_shapes else 0)
    )
    try:
        vmem_cap = int(pltpu.get_tpu_info().vmem_capacity_bytes)
    except Exception:
        vmem_cap = 64 * 2**20            # v7x worst case (per TensorCore)
    vmem_limit = int(min(0.8 * vmem_cap, max(16 * 2**20, 1.5 * est_vmem)))
    # TODO(synk): for very large F_in/F_out add a feature-chunk grid axis so the
    # feat/acc/weight blocks stay within v7x's 64 MiB (and Buffered(1) on w/b).

    out_p = pl.pallas_call(
        kernel,
        out_shape=jax.ShapeDtypeStruct((N, F_out_pad), out_dtype),
        grid_spec=pltpu.PrefetchScalarGridSpec(
            num_scalar_prefetch=0,
            grid=(n_row_tiles, n_k_tiles),
            in_specs=in_specs,
            out_specs=out_spec,
            scratch_shapes=scratch_shapes,
        ),
        compiler_params=pltpu.CompilerParams(
            dimension_semantics=("parallel", "arbitrary"),
            vmem_limit_bytes=vmem_limit,
        ),
        cost_estimate=cost,
    )(*operands)

    return out_p if F_out == F_out_pad else out_p[:, :F_out]


def _run_case(key, N, F_in, F_out, tol=2e-2):
    k_x, k_adj, k_w, k_b = jax.random.split(key, 4)
    # Deterministic parameter init mirroring reset_parameters():
    #   stdv = 1 / sqrt(out_features); uniform(-stdv, stdv)
    stdv = 1.0 / math.sqrt(F_out)
    w = jax.random.uniform(k_w, (F_in, F_out), jnp.float32, minval=-stdv, maxval=stdv)
    b = jax.random.uniform(k_b, (F_out,), jnp.float32, minval=-stdv, maxval=stdv)
    x = jax.random.uniform(k_x, (N, F_in), jnp.float32)
    adj_raw = jax.random.uniform(k_adj, (N, N), jnp.float32)
    adj = adj_raw / jnp.sum(adj_raw, axis=1, keepdims=True)

    out = gcn_forward(x, adj, w, b)
    out = jax.block_until_ready(out)

    # Reference (plain JAX) — same semantics as torch.mm / torch.spmm / + bias.
    ref = adj @ (x @ w) + b
    assert out.shape == (N, F_out)
    # bf16 MXU inputs with f32 accumulation -> relaxed tolerance vs f32 ref.
    assert jnp.allclose(out, ref, atol=tol, rtol=tol), "mismatch vs reference"


if __name__ == "__main__":
    key = jax.random.PRNGKey(0)
    k1, k2 = jax.random.split(key)

    # Module-sized config: GraphConvolution(16 -> 32), N=8 nodes (fused path,
    # ragged tail tiles).
    _run_case(k1, N=8, F_in=16, F_out=32)

    # Secondary config exercising the hoisted (support = x @ w) path with a
    # direct-into-output accumulator and ragged tiles.
    _run_case(k2, N=96, F_in=300, F_out=64)

    print("KERNEL_OK")
</pallas_src>

<mosaic_0001>
module attributes {stable_mosaic.version = 11 : i64} {
  func.func @kernel(%arg0: i32, %arg1: i32, %arg2: memref<128x128xf32, #tpu.memory_space<vmem>>, %arg3: memref<128x128xbf16, #tpu.memory_space<vmem>>, %arg4: memref<128x128xbf16, #tpu.memory_space<vmem>>, %arg5: memref<1x128xf32, #tpu.memory_space<vmem>>, %arg6: memref<128x128xf32, #tpu.memory_space<vmem>>, %arg7: memref<128x128xf32, #tpu.memory_space<vmem>>) attributes {dimension_semantics = [#tpu.dimension_semantics<parallel>, #tpu.dimension_semantics<arbitrary>], iteration_bounds = array<i64: 1, 1>, scalar_prefetch = 0 : i64, scratch_operands = 1 : i64, tpu.core_type = #tpu.core_type<tc>, window_params = [{transform_indices = @transform_0, window_bounds = array<i64: 128, 128>}, {transform_indices = @transform_1, window_bounds = array<i64: 128, 128>}, {pipeline_mode = #tpu.pipeline_mode<synchronous>, transform_indices = @transform_2, window_bounds = array<i64: 128, 128>}, {pipeline_mode = #tpu.pipeline_mode<synchronous>, transform_indices = @transform_3, window_bounds = array<i64: 1, 128>}, {transform_indices = @transform_4, window_bounds = array<i64: 128, 128>}]} {
    %c0_i32 = arith.constant 0 : i32
    %0 = arith.cmpi eq, %arg1, %c0_i32 : i32
    %1 = arith.extui %0 : i1 to i32
    %c0_i32_0 = arith.constant 0 : i32
    %2 = arith.cmpi ne, %1, %c0_i32_0 : i32
    scf.if %2 {
      %cst_11 = arith.constant 0.000000e+00 : f32
      %21 = vector.broadcast %cst_11 : f32 to vector<128x128xf32>
      %c0_12 = arith.constant 0 : index
      %c0_13 = arith.constant 0 : index
      %22 = vector.load %arg7[%c0_12, %c0_13] : memref<128x128xf32, #tpu.memory_space<vmem>>, vector<128x128xf32>
      tpu.vector_store %arg7[%c0_12, %c0_13], %21 {strides = array<i32>} : memref<128x128xf32, #tpu.memory_space<vmem>>, vector<128x128xf32>,
    } else {
    }
    %c0 = arith.constant 0 : index
    %c0_1 = arith.constant 0 : index
    %3 = vector.load %arg7[%c0, %c0_1] : memref<128x128xf32, #tpu.memory_space<vmem>>, vector<128x128xf32>
    %c0_2 = arith.constant 0 : index
    %c0_3 = arith.constant 0 : index
    %4 = vector.load %arg2[%c0_2, %c0_3] : memref<128x128xf32, #tpu.memory_space<vmem>>, vector<128x128xf32>
    %5 = tpu.iota {dimensions = array<i32: 1>} : vector<128x128xi32>
    %c128_i32 = arith.constant 128 : i32
    %6 = arith.muli %arg1, %c128_i32 : i32
    %7 = vector.broadcast %6 : i32 to vector<128x128xi32>
    %8 = arith.addi %5, %7 : vector<128x128xi32>
    %c8_i32 = arith.constant 8 : i32
    %9 = vector.broadcast %c8_i32 : i32 to vector<128x128xi32>
    %10 = arith.cmpi slt, %8, %9 : vector<128x128xi32>
    %cst = arith.constant 0.000000e+00 : f32
    %11 = vector.broadcast %cst : f32 to vector<128x128xf32>
    %12 = arith.select %10, %4, %11 : vector<128x128xi1>, vector<128x128xf32>
    %13 = arith.truncf %12 : vector<128x128xf32> to vector<128x128xbf16>
    %c0_4 = arith.constant 0 : index
    %c0_5 = arith.constant 0 : index
    %14 = vector.load %arg3[%c0_4, %c0_5] : memref<128x128xbf16, #tpu.memory_space<vmem>>, vector<128x128xbf16>
    %cst_6 = arith.constant dense<0.000000e+00> : vector<128x128xf32>
    %15 = tpu.matmul %13, %14, %cst_6 {dimension_numbers = #tpu.dot_dimension_numbers<[1], [0], [0], [1], [0, 0, 1, 1], [], []>} : vector<128x128xbf16>, vector<128x128xbf16>, vector<128x128xf32> -> vector<128x128xf32>
    %16 = arith.addf %3, %15 : vector<128x128xf32>
    %c0_7 = arith.constant 0 : index
    %c0_8 = arith.constant 0 : index
    %17 = vector.load %arg7[%c0_7, %c0_8] : memref<128x128xf32, #tpu.memory_space<vmem>>, vector<128x128xf32>
    tpu.vector_store %arg7[%c0_7, %c0_8], %16 {strides = array<i32>} : memref<128x128xf32, #tpu.memory_space<vmem>>, vector<128x128xf32>,
    %c0_i32_9 = arith.constant 0 : i32
    %18 = arith.cmpi eq, %arg1, %c0_i32_9 : i32
    %19 = arith.extui %18 : i1 to i32
    %c0_i32_10 = arith.constant 0 : i32
    %20 = arith.cmpi ne, %19, %c0_i32_10 : i32
    scf.if %20 {
      %c0_11 = arith.constant 0 : index
      %c0_12 = arith.constant 0 : index
      %21 = vector.load %arg7[%c0_11, %c0_12] : memref<128x128xf32, #tpu.memory_space<vmem>>, vector<128x128xf32>
      %22 = arith.truncf %21 : vector<128x128xf32> to vector<128x128xbf16>
      %c0_13 = arith.constant 0 : index
      %c0_14 = arith.constant 0 : index
      %23 = vector.load %arg4[%c0_13, %c0_14] : memref<128x128xbf16, #tpu.memory_space<vmem>>, vector<128x128xbf16>
      %cst_15 = arith.constant dense<0.000000e+00> : vector<128x128xf32>
      %24 = tpu.matmul %22, %23, %cst_15 {dimension_numbers = #tpu.dot_dimension_numbers<[1], [0], [0], [1], [0, 0, 1, 1], [], []>} : vector<128x128xbf16>, vector<128x128xbf16>, vector<128x128xf32> -> vector<128x128xf32>
      %c0_16 = arith.constant 0 : index
      %c0_17 = arith.constant 0 : index
      %25 = vector.load %arg5[%c0_16, %c0_17] : memref<1x128xf32, #tpu.memory_space<vmem>>, vector<1x128xf32>
      %26 = vector.broadcast %25 : vector<1x128xf32> to vector<128x128xf32>
      %27 = arith.addf %24, %26 : vector<128x128xf32>
      %c0_18 = arith.constant 0 : index
      %c0_19 = arith.constant 0 : index
      %28 = vector.load %arg6[%c0_18, %c0_19] : memref<128x128xf32, #tpu.memory_space<vmem>>, vector<128x128xf32>
      tpu.vector_store %arg6[%c0_18, %c0_19], %27 {strides = array<i32>} : memref<128x128xf32, #tpu.memory_space<vmem>>, vector<128x128xf32>,
    } else {
    }
    return
  }
  func.func @transform_0(%arg0: i32, %arg1: i32) -> (i32, i32) {
    %c0_i32 = arith.constant 0 : i32
    return %arg0, %arg1 : i32, i32
  }
  func.func @transform_1(%arg0: i32, %arg1: i32) -> (i32, i32) {
    %c0_i32 = arith.constant 0 : i32
    %c0_i32_0 = arith.constant 0 : i32
    return %arg1, %c0_i32 : i32, i32
  }
  func.func @transform_2(%arg0: i32, %arg1: i32) -> (i32, i32) {
    %c0_i32 = arith.constant 0 : i32
    %c0_i32_0 = arith.constant 0 : i32
    %c0_i32_1 = arith.constant 0 : i32
    return %c0_i32, %c0_i32_0 : i32, i32
  }
  func.func @transform_3(%arg0: i32, %arg1: i32) -> (i32, i32) {
    %c0_i32 = arith.constant 0 : i32
    %c0_i32_0 = arith.constant 0 : i32
    %c0_i32_1 = arith.constant 0 : i32
    return %c0_i32, %c0_i32_0 : i32, i32
  }
  func.func @transform_4(%arg0: i32, %arg1: i32) -> (i32, i32) {
    %c0_i32 = arith.constant 0 : i32
    %c0_i32_0 = arith.constant 0 : i32
    return %arg0, %c0_i32 : i32, i32
  }
}

</mosaic_0001>

<bundles_post_ra>
// kernel: gcn_forward.1
= control target key start
LH: loop header
LB: loop body
LE: loop exit
PB: predicated region body
PF: predicated region fallthrough
CT: control target
= control target key end

     0   :  { %9 = vsyncpa [#allocation4], 0  ;;  %v70_v6 = vlaneseq  ;;  %s723_s0 = inlined_call_operand.vmem [shape: f32[8,8], index: 0, kind: input, shape index: {}]   ;;  %s724_s1 = inlined_call_operand.vmem [shape: bf16[128,128], index: 1, kind: input, shape index: {}]   ;;  %s725_s2 = inlined_call_operand.vmem [shape: bf16[128,128], index: 2, kind: input, shape index: {}]   ;;  %s726_s3 = inlined_call_operand.vmem [shape: f32[1,128], index: 3, kind: input, shape index: {}]   ;;  %s727_s4 = inlined_call_operand.hbm [shape: f32[8,128], index: 4, kind: output, shape index: {}]  }
   0x1   :  { %v518_v0 = vld [vmem:[%s724_s1 + $0x38] sm:$0xff]  ;;  %v517_v1 = vld [vmem:[%s724_s1 + $0x30] sm:$0xff]  ;;  %v516_v2 = vld [vmem:[%s724_s1 + $0x28] sm:$0xff] }
   0x2   :  { %164 = vmatpush.bf16.msra.mxu0 %v518_v0  ;;  %527 = vmatpush.bf16.msra.mxu2 %v518_v0  ;;  %v515_v3 = vld [vmem:[%s724_s1 + $0x20] sm:$0xff]  ;;  %v514_v4 = vld [vmem:[%s724_s1 + $0x18] sm:$0xff]  ;;  %v513_v5 = vld [vmem:[%s724_s1 + $0x10] sm:$0xff]  ;;  %v71_v8 = vand.u32 127, %v70_v6 }
   0x3   :  { %v512_v7 = vld [vmem:[%s724_s1 + $0x8] sm:$0xff]  ;;  %v511_v9 = vld [vmem:[%s724_s1] sm:$0xff]  ;;  %v56_v17 = vld [vmem:[%s723_s0 + $0x10] sm:$0xff] }
   0x4   :  { %v54_v10 = vld [vmem:[%s723_s0] sm:$0xff]  ;;  %v55_v11 = vld [vmem:[%s723_s0 + $0x8] sm:$0xff]  ;;  %vm75_vm0 = vcmp.lt.s32.totalorder %v71_v8, 8  ;;  %v57_v18 = vld [vmem:[%s723_s0 + $0x18] sm:$0xff] }
   0x5   :  { %v62_v12 = vld [vmem:[%s723_s0 + $0x40] sm:$0xff]  ;;  %v63_v13 = vld [vmem:[%s723_s0 + $0x48] sm:$0xff]  ;;  %v456_v14 = vpack.c.bf16 %v55_v11, %v54_v10  ;;  %vm637_vm1 = vmpackc.low %vm75_vm0, %vm75_vm0  ;;  %v459_v21 = vpack.c.bf16 %v57_v18, %v56_v17 }
   0x6   :  { %165 = vmatpush.bf16.msra.mxu0 %v517_v1  ;;  %528 = vmatpush.bf16.msra.mxu2 %v517_v1  ;;  %v468_v15 = vpack.c.bf16 %v63_v13, %v62_v12  ;;  %v64_v19 = vld [vmem:[%s723_s0 + $0x50] sm:$0xff]  ;;  %v65_v20 = vld [vmem:[%s723_s0 + $0x58] sm:$0xff]  ;;  %v524_v25 = vld [vmem:[%s725_s2 + $0x28] sm:$0xff] }
   0x7   :  { %v471_v22 = vpack.c.bf16 %v65_v20, %v64_v19  ;;  %v526_v23 = vld [vmem:[%s725_s2 + $0x38] sm:$0xff]  ;;  %v525_v24 = vld [vmem:[%s725_s2 + $0x30] sm:$0xff]  ;;  %v58_v26 = vld [vmem:[%s723_s0 + $0x20] sm:$0xff] }
   0x8   :  { %340 = vmatpush.bf16.msra.mxu1 %v526_v23  ;;  %535 = vmatpush.bf16.msra.mxu3 %v526_v23  ;;  %v59_v27 = vld [vmem:[%s723_s0 + $0x28] sm:$0xff]  ;;  %v66_v28 = vld [vmem:[%s723_s0 + $0x60] sm:$0xff]  ;;  %v522_v33 = vld [vmem:[%s725_s2 + $0x18] sm:$0xff] }
   0x9   :  { %v67_v29 = vld [vmem:[%s723_s0 + $0x68] sm:$0xff]  ;;  %v523_v30 = vld [vmem:[%s725_s2 + $0x20] sm:$0xff]  ;;  %v462_v31 = vpack.c.bf16 %v59_v27, %v58_v26  ;;  %v60_v34 = vld [vmem:[%s723_s0 + $0x30] sm:$0xff] }
   0xa   :  { %166 = vmatpush.bf16.msra.mxu0 %v516_v2  ;;  %529 = vmatpush.bf16.msra.mxu2 %v516_v2  ;;  %v474_v32 = vpack.c.bf16 %v67_v29, %v66_v28  ;;  %v61_v35 = vld [vmem:[%s723_s0 + $0x38] sm:$0xff]  ;;  %v68_v36 = vld [vmem:[%s723_s0 + $0x70] sm:$0xff]  ;;  %v520_v41 = vld [vmem:[%s725_s2 + $0x8] sm:$0xff] }
   0xb   :  { %v69_v37 = vld [vmem:[%s723_s0 + $0x78] sm:$0xff]  ;;  %v465_v38 = vpack.c.bf16 %v61_v35, %v60_v34  ;;  %v521_v40 = vld [vmem:[%s725_s2 + $0x10] sm:$0xff]  ;;  %v519_v42 = vld [vmem:[%s725_s2] sm:$0xff] }
   0xc   :  { %341 = vmatpush.bf16.msra.mxu1 %v525_v24  ;;  %536 = vmatpush.bf16.msra.mxu3 %v525_v24  ;;  %v477_v39 = vpack.c.bf16 %v69_v37, %v68_v36 }
   0xe   :  { %167 = vmatpush.bf16.msra.mxu0 %v515_v3  ;;  %530 = vmatpush.bf16.msra.mxu2 %v515_v3  ;;  %v546_v3 = vld [vmem:[%s726_s3] ss:$0 sm:$0xff] }
  0x10   :  { %342 = vmatpush.bf16.msra.mxu1 %v524_v25  ;;  %537 = vmatpush.bf16.msra.mxu3 %v524_v25 }
  0x12   :  { %168 = vmatpush.bf16.msra.mxu0 %v514_v4  ;;  %531 = vmatpush.bf16.msra.mxu2 %v514_v4 }
  0x14   :  { %343 = vmatpush.bf16.msra.mxu1 %v523_v30  ;;  %538 = vmatpush.bf16.msra.mxu3 %v523_v30 }
  0x16   :  { %169 = vmatpush.bf16.msra.mxu0 %v513_v5  ;;  %532 = vmatpush.bf16.msra.mxu2 %v513_v5 }
  0x18   :  { %344 = vmatpush.bf16.msra.mxu1 %v522_v33  ;;  %539 = vmatpush.bf16.msra.mxu3 %v522_v33 }
  0x1a   :  { %170 = vmatpush.bf16.msra.mxu0 %v512_v7  ;;  %533 = vmatpush.bf16.msra.mxu2 %v512_v7 }
  0x1c   :  { %345 = vmatpush.bf16.msra.mxu1 %v521_v40  ;;  %540 = vmatpush.bf16.msra.mxu3 %v521_v40 }
  0x1e   :  { %171 = vmatpush.bf16.msra.mxu0 %v511_v9  ;;  %534 = vmatpush.bf16.msra.mxu2 %v511_v9 }
  0x20   :  { %346 = vmatpush.bf16.msra.mxu1 %v520_v41  ;;  %541 = vmatpush.bf16.msra.mxu3 %v520_v41 }
  0x21   :  { %457 = vmatmul.msk.bf16.vlgmr.msra.gmra.mxu0 %vm637_vm1, %v456_v14  ;;  %469 = vmatmul.msk.bf16.vlgmr.msra.gmra.mxu2 %vm637_vm1, %v468_v15 }
  0x24   :  { %347 = vmatpush.bf16.msra.mxu1 %v519_v42  ;;  %542 = vmatpush.bf16.msra.mxu3 %v519_v42 }
  0x31   :  { %460 = vmatmul.msk.bf16.gmra.mxu0 %vm637_vm1, %v459_v21  ;;  %472 = vmatmul.msk.bf16.gmra.mxu2 %vm637_vm1, %v471_v22 }
  0x41   :  { %463 = vmatmul.msk.bf16.gmra.mxu0 %vm637_vm1, %v462_v31  ;;  %475 = vmatmul.msk.bf16.gmra.mxu2 %vm637_vm1, %v474_v32 }
  0x51   :  { %466 = vmatmul.msk.bf16.gmra.mxu0 %vm637_vm1, %v465_v38  ;;  %478 = vmatmul.msk.bf16.gmra.mxu2 %vm637_vm1, %v477_v39 }
  0x9e   :  { %v173_v43 = vpop.f32.mrf.mxu0 }
  0xa4   :  { %v193_v44 = vpop.f32.mrf.mxu2 }
  0xa6   :  { %v175_v45 = vpop.f32.mrf.mxu0 }
  0xa7   :  { %v264_v46 = vpack.c.bf16 %v175_v45, %v173_v43 }
  0xa9   :  { %348 = vmatmul.bf16.vlgmr.msra.gmra.mxu1 %v264_v46 }
  0xac   :  { %v195_v47 = vpop.f32.mrf.mxu2 }
  0xad   :  { %v268_v48 = vpack.c.bf16 %v195_v47, %v193_v44 }
  0xae   :  { %v178_v49 = vpop.f32.mrf.mxu0 }
  0xaf   :  { %368 = vmatmul.bf16.vlgmr.msra.gmra.mxu3 %v268_v48 }
  0xb4   :  { %v198_v50 = vpop.f32.mrf.mxu2 }
  0xb6   :  { %v180_v51 = vpop.f32.mrf.mxu0 }
  0xb7   :  { %v265_v52 = vpack.c.bf16 %v180_v51, %v178_v49 }
  0xb9   :  { %353 = vmatmul.bf16.gmra.mxu1 %v265_v52 }
  0xbc   :  { %v200_v53 = vpop.f32.mrf.mxu2 }
  0xbd   :  { %v269_v54 = vpack.c.bf16 %v200_v53, %v198_v50 }
  0xbe   :  { %v183_v55 = vpop.f32.mrf.mxu0 }
  0xbf   :  { %373 = vmatmul.bf16.gmra.mxu3 %v269_v54 }
  0xc4   :  { %v203_v56 = vpop.f32.mrf.mxu2 }
  0xc6   :  { %v185_v57 = vpop.f32.mrf.mxu0 }
  0xc7   :  { %v266_v58 = vpack.c.bf16 %v185_v57, %v183_v55 }
  0xc9   :  { %358 = vmatmul.bf16.gmra.mxu1 %v266_v58 }
  0xcc   :  { %v205_v59 = vpop.f32.mrf.mxu2 }
  0xcd   :  { %v270_v60 = vpack.c.bf16 %v205_v59, %v203_v56 }
  0xce   :  { %v188_v61 = vpop.f32.mrf.mxu0 }
  0xcf   :  { %378 = vmatmul.bf16.gmra.mxu3 %v270_v60 }
  0xd4   :  { %v208_v62 = vpop.f32.mrf.mxu2 }
  0xd6   :  { %v190_v63 = vpop.f32.mrf.mxu0 }
  0xd7   :  { %v267_v0 = vpack.c.bf16 %v190_v63, %v188_v61 }
  0xd9   :  { %363 = vmatmul.bf16.gmra.mxu1 %v267_v0 }
  0xdc   :  { %v210_v1 = vpop.f32.mrf.mxu2 }
  0xdd   :  { %v271_v2 = vpack.c.bf16 %v210_v1, %v208_v62 }
  0xdf   :  { %383 = vmatmul.bf16.gmra.mxu3 %v271_v2 }
 0x126   :  { %v349_v4 = vpop.f32.mrf.mxu1 }
 0x127   :  { %v350_v5 = vadd.f32 %v546_v3, %v349_v4 }
 0x129   :  { %389 = vst [vmem:[#allocation3] sm:$0xff] %v350_v5 }
 0x12e   :  { %v351_v6 = vpop.f32.mrf.mxu1 }
 0x12f   :  { %v352_v7 = vadd.f32 %v546_v3, %v351_v6 }
 0x131   :  { %390 = vst [vmem:[#allocation3 + $0x8] sm:$0xff] %v352_v7 }
 0x132   :  { %v369_v8 = vpop.f32.mrf.mxu3 }
 0x133   :  { %v370_v9 = vadd.f32 %v546_v3, %v369_v8 }
 0x135   :  { %397 = vst [vmem:[#allocation3 + $0x40] sm:$0xff] %v370_v9 }
 0x136   :  { %v354_v10 = vpop.f32.mrf.mxu1 }
 0x137   :  { %v355_v11 = vadd.f32 %v546_v3, %v354_v10 }
 0x139   :  { %391 = vst [vmem:[#allocation3 + $0x10] sm:$0xff] %v355_v11 }
 0x13a   :  { %v371_v12 = vpop.f32.mrf.mxu3 }
 0x13b   :  { %v372_v13 = vadd.f32 %v546_v3, %v371_v12 }
 0x13d   :  { %398 = vst [vmem:[#allocation3 + $0x48] sm:$0xff] %v372_v13 }
 0x13e   :  { %v356_v14 = vpop.f32.mrf.mxu1 }
 0x13f   :  { %v357_v15 = vadd.f32 %v546_v3, %v356_v14 }
 0x141   :  { %392 = vst [vmem:[#allocation3 + $0x18] sm:$0xff] %v357_v15 }
 0x142   :  { %v374_v16 = vpop.f32.mrf.mxu3 }
 0x143   :  { %v375_v17 = vadd.f32 %v546_v3, %v374_v16 }
 0x145   :  { %399 = vst [vmem:[#allocation3 + $0x50] sm:$0xff] %v375_v17 }
 0x146   :  { %v359_v18 = vpop.f32.mrf.mxu1 }
 0x147   :  { %v360_v19 = vadd.f32 %v546_v3, %v359_v18 }
 0x149   :  { %393 = vst [vmem:[#allocation3 + $0x20] sm:$0xff] %v360_v19 }
 0x14a   :  { %v376_v20 = vpop.f32.mrf.mxu3 }
 0x14b   :  { %v377_v21 = vadd.f32 %v546_v3, %v376_v20 }
 0x14d   :  { %400 = vst [vmem:[#allocation3 + $0x58] sm:$0xff] %v377_v21 }
 0x14e   :  { %v361_v22 = vpop.f32.mrf.mxu1 }
 0x14f   :  { %v362_v23 = vadd.f32 %v546_v3, %v361_v22 }
 0x151   :  { %394 = vst [vmem:[#allocation3 + $0x28] sm:$0xff] %v362_v23 }
 0x152   :  { %v379_v24 = vpop.f32.mrf.mxu3 }
 0x153   :  { %v380_v25 = vadd.f32 %v546_v3, %v379_v24 }
 0x155   :  { %401 = vst [vmem:[#allocation3 + $0x60] sm:$0xff] %v380_v25 }
 0x156   :  { %v364_v26 = vpop.f32.mrf.mxu1 }
 0x157   :  { %v365_v27 = vadd.f32 %v546_v3, %v364_v26 }
 0x159   :  { %395 = vst [vmem:[#allocation3 + $0x30] sm:$0xff] %v365_v27 }
 0x15a   :  { %v381_v28 = vpop.f32.mrf.mxu3 }
 0x15b   :  { %v382_v29 = vadd.f32 %v546_v3, %v381_v28 }
 0x15d   :  { %402 = vst [vmem:[#allocation3 + $0x68] sm:$0xff] %v382_v29 }
 0x15e   :  { %v366_v30 = vpop.f32.mrf.mxu1 }
 0x15f   :  { %v367_v31 = vadd.f32 %v546_v3, %v366_v30 }
 0x161   :  { %396 = vst [vmem:[#allocation3 + $0x38] sm:$0xff] %v367_v31 }
 0x162   :  { %v384_v32 = vpop.f32.mrf.mxu3 }
 0x163   :  { %v385_v33 = vadd.f32 %v546_v3, %v384_v32 }
 0x165   :  { %403 = vst [vmem:[#allocation3 + $0x70] sm:$0xff] %v385_v33 }
 0x16a   :  { %v386_v34 = vpop.f32.mrf.mxu3 }
 0x16b   :  { %v387_v35 = vadd.f32 %v546_v3, %v386_v34 }
 0x16d   :  { %404 = vst [vmem:[#allocation3 + $0x78] sm:$0xff] %v387_v35 }
 0x16e   :  { %408 = vsyncadd [#allocation4], 1920  ;;  %s411_s26 = sshll.u32 %s727_s4, 4  ;;  %s573_s27 = smov [#allocation3]   ;;  %s412_s26 = int_to_ptr.hbm [resolvable:$true] %s411_s26 }
 0x16f   :  { %s409_s28 = sshll.u32 %s573_s27, 4  ;;  %s574_s29 = smov 128   ;;  %s410_s28 = int_to_ptr.vmem [resolvable:$true] %s409_s28 }
 0x170   :  { %s575_s30 = smov 8  }
 0x171   :  { %417 = dma.vmem_to_hbm [thread:$0]  %s410_s28, 128, %s412_s26, [#allocation4], %s574_s29, %s574_s29, %s575_s30  }
 0x172   :  { %571 = dma.done.wait [#allocation4], 2048  }
 0x173   :  { %572 = vsyncadd [#allocation4], 4294965248 }
 0x174   :  { %422 = vsyncpa [#allocation4], 1 }

</bundles_post_ra>
